<compile_context>
chip_gen: v6e
topology: v6e:2x2x1
jax: 0.10.0
libtpu: 0.0.40
codegen_flags: <defaults>
</compile_context>

<pallas_src>
import functools

import jax
import jax.numpy as jnp
from jax.experimental import pallas as pl
from jax.experimental.pallas import tpu as pltpu

_LANES = 128
_SUBLANES = 8


def _round_up(x, m):
    return ((x + m - 1) // m) * m


def _mse_partial_kernel(pred_ref, targ_ref, out_ref, *, block_rows, total_rows,
                        needs_mask):
    # pred_ref / targ_ref: (block_rows, 128) VMEM tiles in the input dtype.
    # out_ref            : (8, 128) f32 per-tile partial sums (lane-dense).
    d = pred_ref[...].astype(jnp.float32) - targ_ref[...].astype(jnp.float32)
    if needs_mask:
        # Last block extends past the array; OOB rows hold garbage -> zero them.
        row = jax.lax.broadcasted_iota(jnp.int32, d.shape, 0)
        valid = (pl.program_id(0) * block_rows + row) < total_rows
        d = jnp.where(valid, d, 0.0)
    sq = d * d
    # Fold the tile into one (8, 128) vreg of partial sums. The reshape groups
    # whole (8, 128) vregs (no relayout); the reduction is vreg-wise VPU adds.
    out_ref[...] = jnp.sum(
        sq.reshape(block_rows // _SUBLANES, _SUBLANES, _LANES), axis=0)


def mse_loss(predicted, target, *, tile_rows=8192):
    """Mean squared error between two same-shaped arrays, computed with a
    tiled, pipelined Pallas TPU kernel. Returns a float32 scalar."""
    assert predicted.shape == target.shape, "predicted/target shape mismatch"
    n = predicted.size  # true element count for the mean

    if predicted.dtype != target.dtype:
        common = jnp.result_type(predicted.dtype, target.dtype)
        predicted = predicted.astype(common)
        target = target.astype(common)
    itemsize = jnp.dtype(predicted.dtype).itemsize
    # Sublane granularity of this dtype's (packed) tiling.
    sub = {4: 8, 2: 16, 1: 32}.get(itemsize, 8)

    p = predicted.reshape(-1)
    t = target.reshape(-1)

    # Lane-dense layout: (rows, 128). Only pad in the rare case the flat
    # length is not a multiple of 128 (zero diff contributes 0; the mean
    # divisor stays the true element count).
    padded_n = _round_up(n, _LANES)
    if padded_n != n:
        # TODO(synk): this fallback costs one extra copy pass; only hit when
        # the total element count is not a multiple of 128.
        p = jnp.pad(p, (0, padded_n - n))
        t = jnp.pad(t, (0, padded_n - n))
    rows = padded_n // _LANES
    p2 = p.reshape(rows, _LANES)
    t2 = t.reshape(rows, _LANES)

    # Tile height: big enough to amortize the ~0.35us/step grid overhead,
    # small enough to (a) keep >= 2 grid steps so the parallel axis can use
    # both v7x TensorCores and (b) fit double buffers in scoped VMEM.
    half_rows = max(pl.cdiv(rows, 2), 1)
    tr = max(_round_up(min(int(tile_rows), half_rows), sub), sub)
    num_tiles = pl.cdiv(rows, tr)
    needs_mask = (rows % tr) != 0  # last block partial -> mask in-kernel

    in_buf_bytes = 2 * 2 * tr * _LANES * itemsize  # 2 inputs x 2 buffers
    vmem_limit = max(32 << 20, in_buf_bytes + (4 << 20))

    kernel = functools.partial(
        _mse_partial_kernel,
        block_rows=tr, total_rows=rows, needs_mask=needs_mask)

    partials = pl.pallas_call(
        kernel,
        out_shape=jax.ShapeDtypeStruct((num_tiles * _SUBLANES, _LANES),
                                       jnp.float32),
        grid=(num_tiles,),
        in_specs=[
            pl.BlockSpec((tr, _LANES), lambda i: (i, 0)),
            pl.BlockSpec((tr, _LANES), lambda i: (i, 0)),
        ],
        out_specs=pl.BlockSpec((_SUBLANES, _LANES), lambda i: (i, 0)),
        compiler_params=pltpu.CompilerParams(
            dimension_semantics=("parallel",),
            vmem_limit_bytes=vmem_limit),
        cost_estimate=pl.CostEstimate(
            flops=3 * n,
            transcendentals=0,
            bytes_accessed=2 * n * itemsize
            + num_tiles * _SUBLANES * _LANES * 4),
    )(p2, t2)

    # Tiny final reduction + multiply by precomputed 1/N (no divide) in XLA.
    return jnp.sum(partials) * jnp.float32(1.0 / n)


def _reference(predicted, target):
    # Pure-JAX reference mirroring nn.MSELoss() (mean reduction).
    d = predicted.astype(jnp.float32) - target.astype(jnp.float32)
    return jnp.mean(d * d)


if __name__ == "__main__":
    # Small shapes consistent with a reconstruction loss: (B, C, H, W).
    batch, channels, height, width = 2, 4, 16, 16

    key = jax.random.PRNGKey(0)
    k_pred, k_targ = jax.random.split(key, 2)
    predicted = jax.random.normal(k_pred, (batch, channels, height, width),
                                  dtype=jnp.float32)
    target = jax.random.normal(k_targ, (batch, channels, height, width),
                               dtype=jnp.float32)

    loss = jax.jit(mse_loss)(predicted, target)
    jax.block_until_ready(loss)

    ref = _reference(predicted, target)
    assert jnp.allclose(loss, ref, rtol=1e-5, atol=1e-6), (loss, ref)

    print("KERNEL_OK")
</pallas_src>

<mosaic_0001>
module attributes {stable_mosaic.version = 11 : i64} {
  func.func @_mse_partial_kernel(%arg0: i32, %arg1: memref<8x128xf32, #tpu.memory_space<vmem>>, %arg2: memref<8x128xf32, #tpu.memory_space<vmem>>, %arg3: memref<8x128xf32, #tpu.memory_space<vmem>>) attributes {dimension_semantics = [#tpu.dimension_semantics<parallel>], iteration_bounds = array<i64: 2>, scalar_prefetch = 0 : i64, scratch_operands = 0 : i64, tpu.core_type = #tpu.core_type<tc>, window_params = [{transform_indices = @transform_0, window_bounds = array<i64: 8, 128>}, {transform_indices = @transform_1, window_bounds = array<i64: 8, 128>}, {transform_indices = @transform_2, window_bounds = array<i64: 8, 128>}]} {
    %c0 = arith.constant 0 : index
    %c0_0 = arith.constant 0 : index
    %0 = vector.load %arg1[%c0, %c0_0] : memref<8x128xf32, #tpu.memory_space<vmem>>, vector<8x128xf32>
    %c0_1 = arith.constant 0 : index
    %c0_2 = arith.constant 0 : index
    %1 = vector.load %arg2[%c0_1, %c0_2] : memref<8x128xf32, #tpu.memory_space<vmem>>, vector<8x128xf32>
    %2 = arith.subf %0, %1 : vector<8x128xf32>
    %3 = arith.mulf %2, %2 : vector<8x128xf32>
    %4 = vector.shape_cast %3 : vector<8x128xf32> to vector<1x8x128xf32>
    %cst = arith.constant dense<0.000000e+00> : vector<8x128xf32>
    %5 = vector.multi_reduction <add>, %4, %cst [0] : vector<1x8x128xf32> to vector<8x128xf32>
    %c0_3 = arith.constant 0 : index
    %c0_4 = arith.constant 0 : index
    %6 = vector.load %arg3[%c0_3, %c0_4] : memref<8x128xf32, #tpu.memory_space<vmem>>, vector<8x128xf32>
    tpu.vector_store %arg3[%c0_3, %c0_4], %5 {strides = array<i32>} : memref<8x128xf32, #tpu.memory_space<vmem>>, vector<8x128xf32>,
    return
  }
  func.func @transform_0(%arg0: i32) -> (i32, i32) {
    %c0_i32 = arith.constant 0 : i32
    %c0_i32_0 = arith.constant 0 : i32
    return %arg0, %c0_i32 : i32, i32
  }
  func.func @transform_1(%arg0: i32) -> (i32, i32) {
    %c0_i32 = arith.constant 0 : i32
    %c0_i32_0 = arith.constant 0 : i32
    return %arg0, %c0_i32 : i32, i32
  }
  func.func @transform_2(%arg0: i32) -> (i32, i32) {
    %c0_i32 = arith.constant 0 : i32
    %c0_i32_0 = arith.constant 0 : i32
    return %arg0, %c0_i32 : i32, i32
  }
}

</mosaic_0001>

<bundles_post_ra>
// kernel: mse_loss.1
= control target key start
LH: loop header
LB: loop body
LE: loop exit
PB: predicated region body
PF: predicated region fallthrough
CT: control target
= control target key end

     0   :  { %s249_s9 = smov 0   ;;  %s277_s0 = inlined_call_operand.vmem [shape: f32[16,128], index: 0, kind: input, shape index: {}]   ;;  %s278_s1 = inlined_call_operand.vmem [shape: f32[16,128], index: 1, kind: input, shape index: {}]   ;;  %s279_s2 = inlined_call_operand.vmem [shape: f32[16,128], index: 2, kind: output, shape index: {}]  }
   0x1 LB: > { %s227_s10 = sadd.s32 4294967295, %s251_s9   ;;  %p231_p0 = scmp.ge.s32.totalorder %s251_s9, 1  ;;  %s251_s9 = sphi %s249_s9, %s12_s9  }
   0x2   : > { %p120_p1 = scmp.lt.s32.totalorder %s251_s9, 3 }
   0x4   : > { %p121_p2 = pnand %p231_p0, %p120_p1 }
   0x5   : > { %p144_p3 = scmp.lt.s32.totalorder (!%p121_p2), %s227_s10, 1 }
   0x6   : > { %124 = sbr.rel (%p121_p2) target bundleno = 21 (0x15), region = 28 }
   0xb   : > { %s281_s10 = smov (!%p144_p3, %s227_s10), 1 }
   0xc   : > { %s232_s11 = sshll.u32 %s281_s10, 3 }
   0xd   : > { %s147_s14 = scalar_lea.vmem %s277_s0, %s232_s11  ;;  %s151_s17 = scalar_lea.vmem %s278_s1, %s232_s11 }
   0xe   : > { %v156_v0 = vld [vmem:[%s147_s14] sm:$0xff]  ;;  %s155_s20 = scalar_lea.vmem %s279_s2, %s232_s11 }
   0xf   : > { %v157_v1 = vld [vmem:[%s151_s17] sm:$0xff] }
  0x10   : > { %v158_v2 = vsub.f32 %v156_v0, %v157_v1 }
  0x12   : > { %v159_v3 = vmul.f32 %v158_v2, %v158_v2 }
  0x14   : > { %161 = vst [vmem:[%s155_s20] sm:$0xff] %v159_v3 }
  0x15 PF: > { %s12_s9 = sadd.s32 1, %s251_s9  }
  0x16   : > { %p9_p4 = scmp.ge.s32.totalorder %s12_s9, 4  }
  0x18   :  { %11 = sbr.rel (!%p9_p4) target bundleno = 1 (0x1), region = 61 }

</bundles_post_ra>
